<compile_context>
chip_gen: v6e
topology: v6e:2x2x1
jax: 0.10.0
libtpu: 0.0.40
codegen_flags: <defaults>
</compile_context>

<pallas_src>
import functools
import numpy as np
import jax
import jax.numpy as jnp
from jax import lax
from jax.experimental import pallas as pl
from jax.experimental.pallas import tpu as pltpu

ALPHA_EPS = 1e-4
BETA_EPS = 1e-4
RESI_MIN = 1e-4
RESI_MAX = 1000.0

_LANE = 128
_MAX_ROW_TILE = 1024  # 1024x128 f32 = 512 KiB/buffer; 4 inputs + theta output,
                      # double-buffered ~5 MiB VMEM -> fits v5e/v6e/v7x defaults.

# --- lgamma: Lanczos(g=7) expansion matching XLA/CHLO gammaln coefficients. ---
_LANCZOS_G_PLUS_HALF = 7.5
_INV_G_PLUS_HALF = 1.0 / 7.5
_LOG_G_PLUS_HALF = float(np.log(7.5))
_LOG_SQRT_2PI = float((np.log(2.0) + np.log(np.pi)) / 2.0)
_LANCZOS_C0 = 0.99999999999980993227684700473478
_LANCZOS_CS = (
    676.520368121885098567009190444019, -1259.13921672240287047156078755283,
    771.3234287776530788486528258894, -176.61502916214059906584551354,
    12.507343278686904814458936853, -0.13857109526572011689554707,
    9.984369578019570859563e-6, 1.50563273514931155834e-7,
)

# Pairwise-combined fractions:
#   c_a/(z+p) + c_b/(z+q) = (A*z + B) / (z^2 + C*z + D)
# with A = c_a + c_b, B = c_a*q + c_b*p, C = p+q, D = p*q.  One level of
# pairing only (4 exact divides instead of 8) so f32 conditioning is kept.
_PAIRED = []
for _k in range(0, 8, 2):
    _ca, _cb = _LANCZOS_CS[_k], _LANCZOS_CS[_k + 1]
    _p, _q = float(_k + 1), float(_k + 2)
    _PAIRED.append((_ca + _cb, _ca * _q + _cb * _p, _p + _q, _p * _q))
_PAIRED = tuple(_PAIRED)


def _lgamma(x, *, handle_small_args=False):
    """f32 log-gamma for positive arguments, tracking XLA's gammaln expansion.

    Uses the Lanczos(g=7) series with pairwise-combined fractions (4 divides).
    With handle_small_args=True, arguments < 0.5 are computed via the exact
    recurrence lgamma(x) = lgamma(x+1) - log(x), which keeps the Lanczos
    argument >= 1 (no in-kernel sin() reflection needed).  All divides are
    full-precision f32: theta = exp(lg_up/lg_down) amplifies *absolute*
    lgamma error by ~1e4 when beta ~ 1."""
    if handle_small_args:
        small = x < 0.5
        xs = jnp.where(small, x + 1.0, x)
    else:
        xs = x
    z = xs - 1.0
    z2 = z * z
    a = jnp.full_like(z, _LANCZOS_C0)
    for A, B, C, D in _PAIRED:
        a = a + (A * z + B) / (z2 + C * z + D)
    t = _LANCZOS_G_PLUS_HALF + z
    # log(t) = log(7.5) + log(1 + z/7.5); plain log keeps the deviation far
    # below tolerance and is guaranteed to lower in Mosaic.
    log_t = _LOG_G_PLUS_HALF + jnp.log(1.0 + z * _INV_G_PLUS_HALF)
    lg = _LOG_SQRT_2PI + ((z + 0.5 - t / log_t) * log_t + jnp.log(a))
    if handle_small_args:
        lg = jnp.where(small, lg - jnp.log(x), lg)
    return lg


def _partial_sum_8x128(v):
    """(row_tile, 128) -> (8, 128) vector partial sum via static sublane slices
    (pure VALU adds, which have slack under the EUP-bound body; avoids any
    in-kernel cross-lane reduction)."""
    acc = v[0:8, :]
    for r in range(8, v.shape[0], 8):
        acc = acc + v[r:r + 8, :]
    return acc


def _make_kernel(n_valid, row_tile, num_blocks, needs_mask):
    # Elements of the final tile that are real data (rest is wrapper padding).
    last_block_valid = n_valid - (num_blocks - 1) * row_tile * _LANE

    def kernel(mean_ref, ooa_ref, beta_ref, tgt_ref,
               theta_ref, pabs_ref, psum_ref):
        m = mean_ref[...]
        t = tgt_ref[...]
        ooa1 = ooa_ref[...] + ALPHA_EPS
        beta1 = beta_ref[...] + BETA_EPS

        resi_abs = jnp.abs(m - t)
        resi = jnp.clip(resi_abs * ooa1 * beta1, RESI_MIN, RESI_MAX)

        inv_beta = 1.0 / beta1
        # lgamma(1/beta1): argument drops below 0.5 for beta > ~2, so use the
        # small-argument recurrence there.
        lg_down = _lgamma(inv_beta, handle_small_args=True)
        # lgamma(3/beta1): argument < 0.5 only for beta > ~6.
        lg_up = _lgamma(3.0 * inv_beta, handle_small_args=False)
        # TODO(synk): lg_up skips the small-argument branch; exact gammaln
        # parity assumes beta < ~6 (argument 3/(beta+eps) >= 0.5), which covers
        # practical GenGauss shape parameters.

        theta_ref[...] = (ooa1 * ooa1) * jnp.exp(lg_up / lg_down)

        # fused: -log(ooa1) - log(beta1) == -log(ooa1 * beta1)  (1 EUP log saved)
        l_elem = resi + lg_down - jnp.log(ooa1 * beta1)

        # Per-block (8,128) partial sums: no carried state, grid stays "parallel".
        pabs_ref[0] = _partial_sum_8x128(resi_abs)
        psum_ref[0] = _partial_sum_8x128(l_elem)

        if needs_mask:
            # Only the final block contains padded elements; mask there only so
            # the other blocks pay zero iota/compare/select cost.
            @pl.when(pl.program_id(0) == num_blocks - 1)
            def _():
                rows = lax.broadcasted_iota(jnp.int32, (row_tile, _LANE), 0)
                lanes = lax.broadcasted_iota(jnp.int32, (row_tile, _LANE), 1)
                valid = rows * _LANE + lanes < last_block_valid
                pabs_ref[0] = _partial_sum_8x128(jnp.where(valid, resi_abs, 0.0))
                psum_ref[0] = _partial_sum_8x128(jnp.where(valid, l_elem, 0.0))

        # TODO(synk): torch-side NaN-check prints omitted (host-print diagnostics only).
    return kernel


@functools.partial(jax.jit, static_argnames=("reduction",))
def temp_comb_loss(mean, one_over_alpha, beta, target, T1, T2, reduction="mean"):
    if reduction not in ("mean", "sum"):
        raise ValueError("Reduction not supported")

    orig_shape = mean.shape
    n = int(np.prod(orig_shape)) if orig_shape else 1
    rows = -(-n // _LANE)

    # Balanced tiling: num_blocks = cdiv(rows, MAX_TILE); force >= 2 blocks for
    # anything beyond tiny inputs so both v7x TensorCores get work along the
    # "parallel" grid axis.  row_tile derived from num_blocks bounds padding
    # waste to < 8 dead rows per block.
    num_blocks = -(-rows // _MAX_ROW_TILE)
    if rows > 64:
        num_blocks = max(num_blocks, 2)
    row_tile = ((-(-rows // num_blocks) + 7) // 8) * 8
    padded_rows = num_blocks * row_tile
    pad = padded_rows * _LANE - n

    def flat(x):
        x = x.reshape(-1).astype(jnp.float32)
        if pad:
            # TODO(synk): for pad>0 these jnp.pad copies plus the theta slice
            # below are extra HBM round trips; a tiny tail-block second call
            # would keep the hot path pad-free.
            x = jnp.pad(x, (0, pad))
        return x.reshape(padded_rows, _LANE)

    kernel = _make_kernel(n, row_tile, num_blocks, pad > 0)

    tile_spec = pl.BlockSpec((row_tile, _LANE), lambda i: (i, 0))
    part_spec = pl.BlockSpec((1, 8, _LANE), lambda i: (i, 0, 0))

    theta_flat, pabs, psum = pl.pallas_call(
        kernel,
        grid=(num_blocks,),
        in_specs=[tile_spec] * 4,
        out_specs=[tile_spec, part_spec, part_spec],
        out_shape=[
            jax.ShapeDtypeStruct((padded_rows, _LANE), jnp.float32),
            jax.ShapeDtypeStruct((num_blocks, 8, _LANE), jnp.float32),
            jax.ShapeDtypeStruct((num_blocks, 8, _LANE), jnp.float32),
        ],
        compiler_params=pltpu.CompilerParams(
            dimension_semantics=("parallel",)),
    )(flat(mean), flat(one_over_alpha), flat(beta), flat(target))

    sum_abs = jnp.sum(pabs)
    sum_l = jnp.sum(psum)
    if reduction == "mean":
        l1 = sum_abs / n
        l2 = sum_l / n
    else:  # "sum"
        l1 = sum_abs
        l2 = sum_l

    loss = T1 * l1 + T2 * l2
    theta = theta_flat.reshape(-1)[:n].reshape(orig_shape)
    return loss, theta


def _reference(mean, one_over_alpha, beta, target, T1, T2):
    ooa1 = one_over_alpha + ALPHA_EPS
    beta1 = beta + BETA_EPS
    resi_abs = jnp.abs(mean - target)
    resi = jnp.clip(resi_abs * ooa1 * beta1, RESI_MIN, RESI_MAX)
    inv_beta = 1.0 / beta1
    lg_down = jax.scipy.special.gammaln(inv_beta)
    lg_up = jax.scipy.special.gammaln(3.0 * inv_beta)
    theta = ooa1 ** 2 * jnp.exp(lg_up / lg_down)
    l_elem = resi - jnp.log(ooa1) + lg_down - jnp.log(beta1)
    return T1 * jnp.mean(resi_abs) + T2 * jnp.mean(l_elem), theta


if __name__ == "__main__":
    # Well-conditioned sanity check of the in-kernel lgamma against gammaln on
    # the direct (non-amplified) scale, including the small-argument branch.
    xs = jnp.linspace(0.05, 25.0, 501, dtype=jnp.float32)
    np.testing.assert_allclose(np.asarray(_lgamma(xs, handle_small_args=True)),
                               np.asarray(jax.scipy.special.gammaln(xs)),
                               rtol=2e-5, atol=2e-5)

    key = jax.random.PRNGKey(0)
    k1, k2, k3, k4 = jax.random.split(key, 4)
    B, C, H, W = 2, 4, 16, 16          # NCHW, 2*4*16*16 = 2048 elements
    mean = jax.random.normal(k1, (B, C, H, W), dtype=jnp.float32)
    target = jax.random.normal(k2, (B, C, H, W), dtype=jnp.float32)
    one_over_alpha = jnp.abs(jax.random.normal(k3, (B, C, H, W), jnp.float32)) + 0.5
    beta = 0.5 * jnp.abs(jax.random.normal(k4, (B, C, H, W), jnp.float32)) + 0.5
    T1, T2 = 1.0, 0.5

    loss, theta = temp_comb_loss(mean, one_over_alpha, beta, target, T1, T2)
    jax.block_until_ready((loss, theta))

    ref_loss, ref_theta = _reference(mean, one_over_alpha, beta, target, T1, T2)
    np.testing.assert_allclose(np.asarray(loss), np.asarray(ref_loss),
                               rtol=1e-3, atol=1e-3)
    # theta = (ooa+eps)^2 * exp(lg_up/lg_down): the exp amplifies the absolute
    # f32 error of the lgamma evaluations by |lg_up|/lg_down^2 (~1e4 when
    # beta ~ 1), so ~1% is the attainable agreement between two correct f32
    # gammaln implementations on the worst elements; the loss check above is
    # the well-conditioned one.
    np.testing.assert_allclose(np.asarray(theta), np.asarray(ref_theta),
                               rtol=1e-2, atol=1e-3)
    print("KERNEL_OK")
</pallas_src>

<mosaic_0001>
module attributes {stable_mosaic.version = 11 : i64} {
  func.func @kernel(%arg0: i32, %arg1: memref<16x128xf32, #tpu.memory_space<vmem>>, %arg2: memref<16x128xf32, #tpu.memory_space<vmem>>, %arg3: memref<16x128xf32, #tpu.memory_space<vmem>>, %arg4: memref<16x128xf32, #tpu.memory_space<vmem>>, %arg5: memref<16x128xf32, #tpu.memory_space<vmem>>, %arg6: memref<1x8x128xf32, #tpu.memory_space<vmem>>, %arg7: memref<1x8x128xf32, #tpu.memory_space<vmem>>) attributes {dimension_semantics = [#tpu.dimension_semantics<parallel>], iteration_bounds = array<i64: 1>, scalar_prefetch = 0 : i64, scratch_operands = 0 : i64, tpu.core_type = #tpu.core_type<tc>, window_params = [{transform_indices = @transform_0, window_bounds = array<i64: 16, 128>}, {transform_indices = @transform_1, window_bounds = array<i64: 16, 128>}, {transform_indices = @transform_2, window_bounds = array<i64: 16, 128>}, {transform_indices = @transform_3, window_bounds = array<i64: 16, 128>}, {transform_indices = @transform_4, window_bounds = array<i64: 16, 128>}, {transform_indices = @transform_5, window_bounds = array<i64: 1, 8, 128>}, {transform_indices = @transform_6, window_bounds = array<i64: 1, 8, 128>}]} {
    %c0 = arith.constant 0 : index
    %c0_0 = arith.constant 0 : index
    %0 = vector.load %arg1[%c0, %c0_0] : memref<16x128xf32, #tpu.memory_space<vmem>>, vector<16x128xf32>
    %c0_1 = arith.constant 0 : index
    %c0_2 = arith.constant 0 : index
    %1 = vector.load %arg4[%c0_1, %c0_2] : memref<16x128xf32, #tpu.memory_space<vmem>>, vector<16x128xf32>
    %c0_3 = arith.constant 0 : index
    %c0_4 = arith.constant 0 : index
    %2 = vector.load %arg2[%c0_3, %c0_4] : memref<16x128xf32, #tpu.memory_space<vmem>>, vector<16x128xf32>
    %cst = arith.constant 9.99999974E-5 : f32
    %3 = vector.broadcast %cst : f32 to vector<16x128xf32>
    %4 = arith.addf %2, %3 : vector<16x128xf32>
    %c0_5 = arith.constant 0 : index
    %c0_6 = arith.constant 0 : index
    %5 = vector.load %arg3[%c0_5, %c0_6] : memref<16x128xf32, #tpu.memory_space<vmem>>, vector<16x128xf32>
    %cst_7 = arith.constant 9.99999974E-5 : f32
    %6 = vector.broadcast %cst_7 : f32 to vector<16x128xf32>
    %7 = arith.addf %5, %6 : vector<16x128xf32>
    %8 = arith.subf %0, %1 : vector<16x128xf32>
    %9 = math.absf %8 : vector<16x128xf32>
    %10 = arith.mulf %9, %4 : vector<16x128xf32>
    %11 = arith.mulf %10, %7 : vector<16x128xf32>
    %cst_8 = arith.constant 9.99999974E-5 : f32
    %cst_9 = arith.constant 1.000000e+03 : f32
    %12 = vector.broadcast %cst_8 : f32 to vector<16x128xf32>
    %13 = arith.maximumf %12, %11 : vector<16x128xf32>
    %14 = vector.broadcast %cst_9 : f32 to vector<16x128xf32>
    %15 = arith.minimumf %14, %13 : vector<16x128xf32>
    %cst_10 = arith.constant 1.000000e+00 : f32
    %16 = vector.broadcast %cst_10 : f32 to vector<16x128xf32>
    %17 = arith.divf %16, %7 : vector<16x128xf32>
    %cst_11 = arith.constant 5.000000e-01 : f32
    %18 = vector.broadcast %cst_11 : f32 to vector<16x128xf32>
    %19 = arith.cmpf olt, %17, %18 : vector<16x128xf32>
    %cst_12 = arith.constant 1.000000e+00 : f32
    %20 = vector.broadcast %cst_12 : f32 to vector<16x128xf32>
    %21 = arith.addf %17, %20 : vector<16x128xf32>
    %22 = arith.select %19, %21, %17 : vector<16x128xi1>, vector<16x128xf32>
    %cst_13 = arith.constant 1.000000e+00 : f32
    %23 = vector.broadcast %cst_13 : f32 to vector<16x128xf32>
    %24 = arith.subf %22, %23 : vector<16x128xf32>
    %25 = arith.mulf %24, %24 : vector<16x128xf32>
    %cst_14 = arith.constant 1.000000e+00 : f32
    %26 = vector.broadcast %cst_14 : f32 to vector<16x128xf32>
    %cst_15 = arith.constant -582.618835 : f32
    %27 = vector.broadcast %cst_15 : f32 to vector<16x128xf32>
    %28 = arith.mulf %27, %24 : vector<16x128xf32>
    %cst_16 = arith.constant 93.9015197 : f32
    %29 = vector.broadcast %cst_16 : f32 to vector<16x128xf32>
    %30 = arith.addf %28, %29 : vector<16x128xf32>
    %cst_17 = arith.constant 3.000000e+00 : f32
    %31 = vector.broadcast %cst_17 : f32 to vector<16x128xf32>
    %32 = arith.mulf %31, %24 : vector<16x128xf32>
    %33 = arith.addf %25, %32 : vector<16x128xf32>
    %cst_18 = arith.constant 2.000000e+00 : f32
    %34 = vector.broadcast %cst_18 : f32 to vector<16x128xf32>
    %35 = arith.addf %33, %34 : vector<16x128xf32>
    %36 = arith.divf %30, %35 : vector<16x128xf32>
    %37 = arith.addf %26, %36 : vector<16x128xf32>
    %cst_19 = arith.constant 594.708374 : f32
    %38 = vector.broadcast %cst_19 : f32 to vector<16x128xf32>
    %39 = arith.mulf %38, %24 : vector<16x128xf32>
    %cst_20 = arith.constant 2555.44873 : f32
    %40 = vector.broadcast %cst_20 : f32 to vector<16x128xf32>
    %41 = arith.addf %39, %40 : vector<16x128xf32>
    %cst_21 = arith.constant 7.000000e+00 : f32
    %42 = vector.broadcast %cst_21 : f32 to vector<16x128xf32>
    %43 = arith.mulf %42, %24 : vector<16x128xf32>
    %44 = arith.addf %25, %43 : vector<16x128xf32>
    %cst_22 = arith.constant 1.200000e+01 : f32
    %45 = vector.broadcast %cst_22 : f32 to vector<16x128xf32>
    %46 = arith.addf %44, %45 : vector<16x128xf32>
    %47 = arith.divf %41, %46 : vector<16x128xf32>
    %48 = arith.addf %37, %47 : vector<16x128xf32>
    %cst_23 = arith.constant 12.3687725 : f32
    %49 = vector.broadcast %cst_23 : f32 to vector<16x128xf32>
    %50 = arith.mulf %49, %24 : vector<16x128xf32>
    %cst_24 = arith.constant 74.3512039 : f32
    %51 = vector.broadcast %cst_24 : f32 to vector<16x128xf32>
    %52 = arith.addf %50, %51 : vector<16x128xf32>
    %cst_25 = arith.constant 1.100000e+01 : f32
    %53 = vector.broadcast %cst_25 : f32 to vector<16x128xf32>
    %54 = arith.mulf %53, %24 : vector<16x128xf32>
    %55 = arith.addf %25, %54 : vector<16x128xf32>
    %cst_26 = arith.constant 3.000000e+01 : f32
    %56 = vector.broadcast %cst_26 : f32 to vector<16x128xf32>
    %57 = arith.addf %55, %56 : vector<16x128xf32>
    %58 = arith.divf %52, %57 : vector<16x128xf32>
    %59 = arith.addf %48, %58 : vector<16x128xf32>
    %cst_27 = arith.constant 1.01349333E-5 : f32
    %60 = vector.broadcast %cst_27 : f32 to vector<16x128xf32>
    %61 = arith.mulf %60, %24 : vector<16x128xf32>
    %cst_28 = arith.constant 8.09288976E-5 : f32
    %62 = vector.broadcast %cst_28 : f32 to vector<16x128xf32>
    %63 = arith.addf %61, %62 : vector<16x128xf32>
    %cst_29 = arith.constant 1.500000e+01 : f32
    %64 = vector.broadcast %cst_29 : f32 to vector<16x128xf32>
    %65 = arith.mulf %64, %24 : vector<16x128xf32>
    %66 = arith.addf %25, %65 : vector<16x128xf32>
    %cst_30 = arith.constant 5.600000e+01 : f32
    %67 = vector.broadcast %cst_30 : f32 to vector<16x128xf32>
    %68 = arith.addf %66, %67 : vector<16x128xf32>
    %69 = arith.divf %63, %68 : vector<16x128xf32>
    %70 = arith.addf %59, %69 : vector<16x128xf32>
    %cst_31 = arith.constant 7.500000e+00 : f32
    %71 = vector.broadcast %cst_31 : f32 to vector<16x128xf32>
    %72 = arith.addf %71, %24 : vector<16x128xf32>
    %cst_32 = arith.constant 0.13333334 : f32
    %73 = vector.broadcast %cst_32 : f32 to vector<16x128xf32>
    %74 = arith.mulf %24, %73 : vector<16x128xf32>
    %cst_33 = arith.constant 1.000000e+00 : f32
    %75 = vector.broadcast %cst_33 : f32 to vector<16x128xf32>
    %76 = arith.addf %75, %74 : vector<16x128xf32>
    %77 = math.log %76 : vector<16x128xf32>
    %cst_34 = arith.constant 2.01490307 : f32
    %78 = vector.broadcast %cst_34 : f32 to vector<16x128xf32>
    %79 = arith.addf %78, %77 : vector<16x128xf32>
    %cst_35 = arith.constant 5.000000e-01 : f32
    %80 = vector.broadcast %cst_35 : f32 to vector<16x128xf32>
    %81 = arith.addf %24, %80 : vector<16x128xf32>
    %82 = arith.divf %72, %79 : vector<16x128xf32>
    %83 = arith.subf %81, %82 : vector<16x128xf32>
    %84 = arith.mulf %83, %79 : vector<16x128xf32>
    %85 = math.log %70 : vector<16x128xf32>
    %86 = arith.addf %84, %85 : vector<16x128xf32>
    %cst_36 = arith.constant 0.918938517 : f32
    %87 = vector.broadcast %cst_36 : f32 to vector<16x128xf32>
    %88 = arith.addf %87, %86 : vector<16x128xf32>
    %89 = math.log %17 : vector<16x128xf32>
    %90 = arith.subf %88, %89 : vector<16x128xf32>
    %91 = arith.select %19, %90, %88 : vector<16x128xi1>, vector<16x128xf32>
    %cst_37 = arith.constant 3.000000e+00 : f32
    %92 = vector.broadcast %cst_37 : f32 to vector<16x128xf32>
    %93 = arith.mulf %92, %17 : vector<16x128xf32>
    %cst_38 = arith.constant 1.000000e+00 : f32
    %94 = vector.broadcast %cst_38 : f32 to vector<16x128xf32>
    %95 = arith.subf %93, %94 : vector<16x128xf32>
    %96 = arith.mulf %95, %95 : vector<16x128xf32>
    %cst_39 = arith.constant 1.000000e+00 : f32
    %97 = vector.broadcast %cst_39 : f32 to vector<16x128xf32>
    %cst_40 = arith.constant -582.618835 : f32
    %98 = vector.broadcast %cst_40 : f32 to vector<16x128xf32>
    %99 = arith.mulf %98, %95 : vector<16x128xf32>
    %cst_41 = arith.constant 93.9015197 : f32
    %100 = vector.broadcast %cst_41 : f32 to vector<16x128xf32>
    %101 = arith.addf %99, %100 : vector<16x128xf32>
    %cst_42 = arith.constant 3.000000e+00 : f32
    %102 = vector.broadcast %cst_42 : f32 to vector<16x128xf32>
    %103 = arith.mulf %102, %95 : vector<16x128xf32>
    %104 = arith.addf %96, %103 : vector<16x128xf32>
    %cst_43 = arith.constant 2.000000e+00 : f32
    %105 = vector.broadcast %cst_43 : f32 to vector<16x128xf32>
    %106 = arith.addf %104, %105 : vector<16x128xf32>
    %107 = arith.divf %101, %106 : vector<16x128xf32>
    %108 = arith.addf %97, %107 : vector<16x128xf32>
    %cst_44 = arith.constant 594.708374 : f32
    %109 = vector.broadcast %cst_44 : f32 to vector<16x128xf32>
    %110 = arith.mulf %109, %95 : vector<16x128xf32>
    %cst_45 = arith.constant 2555.44873 : f32
    %111 = vector.broadcast %cst_45 : f32 to vector<16x128xf32>
    %112 = arith.addf %110, %111 : vector<16x128xf32>
    %cst_46 = arith.constant 7.000000e+00 : f32
    %113 = vector.broadcast %cst_46 : f32 to vector<16x128xf32>
    %114 = arith.mulf %113, %95 : vector<16x128xf32>
    %115 = arith.addf %96, %114 : vector<16x128xf32>
    %cst_47 = arith.constant 1.200000e+01 : f32
    %116 = vector.broadcast %cst_47 : f32 to vector<16x128xf32>
    %117 = arith.addf %115, %116 : vector<16x128xf32>
    %118 = arith.divf %112, %117 : vector<16x128xf32>
    %119 = arith.addf %108, %118 : vector<16x128xf32>
    %cst_48 = arith.constant 12.3687725 : f32
    %120 = vector.broadcast %cst_48 : f32 to vector<16x128xf32>
    %121 = arith.mulf %120, %95 : vector<16x128xf32>
    %cst_49 = arith.constant 74.3512039 : f32
    %122 = vector.broadcast %cst_49 : f32 to vector<16x128xf32>
    %123 = arith.addf %121, %122 : vector<16x128xf32>
    %cst_50 = arith.constant 1.100000e+01 : f32
    %124 = vector.broadcast %cst_50 : f32 to vector<16x128xf32>
    %125 = arith.mulf %124, %95 : vector<16x128xf32>
    %126 = arith.addf %96, %125 : vector<16x128xf32>
    %cst_51 = arith.constant 3.000000e+01 : f32
    %127 = vector.broadcast %cst_51 : f32 to vector<16x128xf32>
    %128 = arith.addf %126, %127 : vector<16x128xf32>
    %129 = arith.divf %123, %128 : vector<16x128xf32>
    %130 = arith.addf %119, %129 : vector<16x128xf32>
    %cst_52 = arith.constant 1.01349333E-5 : f32
    %131 = vector.broadcast %cst_52 : f32 to vector<16x128xf32>
    %132 = arith.mulf %131, %95 : vector<16x128xf32>
    %cst_53 = arith.constant 8.09288976E-5 : f32
    %133 = vector.broadcast %cst_53 : f32 to vector<16x128xf32>
    %134 = arith.addf %132, %133 : vector<16x128xf32>
    %cst_54 = arith.constant 1.500000e+01 : f32
    %135 = vector.broadcast %cst_54 : f32 to vector<16x128xf32>
    %136 = arith.mulf %135, %95 : vector<16x128xf32>
    %137 = arith.addf %96, %136 : vector<16x128xf32>
    %cst_55 = arith.constant 5.600000e+01 : f32
    %138 = vector.broadcast %cst_55 : f32 to vector<16x128xf32>
    %139 = arith.addf %137, %138 : vector<16x128xf32>
    %140 = arith.divf %134, %139 : vector<16x128xf32>
    %141 = arith.addf %130, %140 : vector<16x128xf32>
    %cst_56 = arith.constant 7.500000e+00 : f32
    %142 = vector.broadcast %cst_56 : f32 to vector<16x128xf32>
    %143 = arith.addf %142, %95 : vector<16x128xf32>
    %cst_57 = arith.constant 0.13333334 : f32
    %144 = vector.broadcast %cst_57 : f32 to vector<16x128xf32>
    %145 = arith.mulf %95, %144 : vector<16x128xf32>
    %cst_58 = arith.constant 1.000000e+00 : f32
    %146 = vector.broadcast %cst_58 : f32 to vector<16x128xf32>
    %147 = arith.addf %146, %145 : vector<16x128xf32>
    %148 = math.log %147 : vector<16x128xf32>
    %cst_59 = arith.constant 2.01490307 : f32
    %149 = vector.broadcast %cst_59 : f32 to vector<16x128xf32>
    %150 = arith.addf %149, %148 : vector<16x128xf32>
    %cst_60 = arith.constant 5.000000e-01 : f32
    %151 = vector.broadcast %cst_60 : f32 to vector<16x128xf32>
    %152 = arith.addf %95, %151 : vector<16x128xf32>
    %153 = arith.divf %143, %150 : vector<16x128xf32>
    %154 = arith.subf %152, %153 : vector<16x128xf32>
    %155 = arith.mulf %154, %150 : vector<16x128xf32>
    %156 = math.log %141 : vector<16x128xf32>
    %157 = arith.addf %155, %156 : vector<16x128xf32>
    %cst_61 = arith.constant 0.918938517 : f32
    %158 = vector.broadcast %cst_61 : f32 to vector<16x128xf32>
    %159 = arith.addf %158, %157 : vector<16x128xf32>
    %160 = arith.mulf %4, %4 : vector<16x128xf32>
    %161 = arith.divf %159, %91 : vector<16x128xf32>
    %162 = math.exp %161 : vector<16x128xf32>
    %163 = arith.mulf %160, %162 : vector<16x128xf32>
    %c0_62 = arith.constant 0 : index
    %c0_63 = arith.constant 0 : index
    %164 = vector.load %arg5[%c0_62, %c0_63] : memref<16x128xf32, #tpu.memory_space<vmem>>, vector<16x128xf32>
    tpu.vector_store %arg5[%c0_62, %c0_63], %163 {strides = array<i32>} : memref<16x128xf32, #tpu.memory_space<vmem>>, vector<16x128xf32>,
    %165 = arith.addf %15, %91 : vector<16x128xf32>
    %166 = arith.mulf %4, %7 : vector<16x128xf32>
    %167 = math.log %166 : vector<16x128xf32>
    %168 = arith.subf %165, %167 : vector<16x128xf32>
    %169 = vector.extract_strided_slice %9 {offsets = [0, 0], sizes = [8, 128], strides = [1, 1]} : vector<16x128xf32> to vector<8x128xf32>
    %170 = vector.extract_strided_slice %9 {offsets = [8, 0], sizes = [8, 128], strides = [1, 1]} : vector<16x128xf32> to vector<8x128xf32>
    %171 = arith.addf %169, %170 : vector<8x128xf32>
    %c0_64 = arith.constant 0 : index
    %c0_65 = arith.constant 0 : index
    %c0_66 = arith.constant 0 : index
    %172 = vector.load %arg6[%c0_64, %c0_65, %c0_66] : memref<1x8x128xf32, #tpu.memory_space<vmem>>, vector<1x8x128xf32>
    %173 = vector.shape_cast %172 : vector<1x8x128xf32> to vector<8x128xf32>
    %174 = vector.shape_cast %171 : vector<8x128xf32> to vector<1x8x128xf32>
    tpu.vector_store %arg6[%c0_64, %c0_65, %c0_66], %174 {strides = array<i32>} : memref<1x8x128xf32, #tpu.memory_space<vmem>>, vector<1x8x128xf32>,
    %175 = vector.extract_strided_slice %168 {offsets = [0, 0], sizes = [8, 128], strides = [1, 1]} : vector<16x128xf32> to vector<8x128xf32>
    %176 = vector.extract_strided_slice %168 {offsets = [8, 0], sizes = [8, 128], strides = [1, 1]} : vector<16x128xf32> to vector<8x128xf32>
    %177 = arith.addf %175, %176 : vector<8x128xf32>
    %c0_67 = arith.constant 0 : index
    %c0_68 = arith.constant 0 : index
    %c0_69 = arith.constant 0 : index
    %178 = vector.load %arg7[%c0_67, %c0_68, %c0_69] : memref<1x8x128xf32, #tpu.memory_space<vmem>>, vector<1x8x128xf32>
    %179 = vector.shape_cast %178 : vector<1x8x128xf32> to vector<8x128xf32>
    %180 = vector.shape_cast %177 : vector<8x128xf32> to vector<1x8x128xf32>
    tpu.vector_store %arg7[%c0_67, %c0_68, %c0_69], %180 {strides = array<i32>} : memref<1x8x128xf32, #tpu.memory_space<vmem>>, vector<1x8x128xf32>,
    return
  }
  func.func @transform_0(%arg0: i32) -> (i32, i32) {
    %c0_i32 = arith.constant 0 : i32
    %c0_i32_0 = arith.constant 0 : i32
    return %arg0, %c0_i32 : i32, i32
  }
  func.func @transform_1(%arg0: i32) -> (i32, i32) {
    %c0_i32 = arith.constant 0 : i32
    %c0_i32_0 = arith.constant 0 : i32
    return %arg0, %c0_i32 : i32, i32
  }
  func.func @transform_2(%arg0: i32) -> (i32, i32) {
    %c0_i32 = arith.constant 0 : i32
    %c0_i32_0 = arith.constant 0 : i32
    return %arg0, %c0_i32 : i32, i32
  }
  func.func @transform_3(%arg0: i32) -> (i32, i32) {
    %c0_i32 = arith.constant 0 : i32
    %c0_i32_0 = arith.constant 0 : i32
    return %arg0, %c0_i32 : i32, i32
  }
  func.func @transform_4(%arg0: i32) -> (i32, i32) {
    %c0_i32 = arith.constant 0 : i32
    %c0_i32_0 = arith.constant 0 : i32
    return %arg0, %c0_i32 : i32, i32
  }
  func.func @transform_5(%arg0: i32) -> (i32, i32, i32) {
    %c0_i32 = arith.constant 0 : i32
    %c0_i32_0 = arith.constant 0 : i32
    %c0_i32_1 = arith.constant 0 : i32
    return %arg0, %c0_i32, %c0_i32_0 : i32, i32, i32
  }
  func.func @transform_6(%arg0: i32) -> (i32, i32, i32) {
    %c0_i32 = arith.constant 0 : i32
    %c0_i32_0 = arith.constant 0 : i32
    %c0_i32_1 = arith.constant 0 : i32
    return %arg0, %c0_i32, %c0_i32_0 : i32, i32, i32
  }
}

</mosaic_0001>

<bundles_post_ra>
// kernel: temp_comb_loss.1
= control target key start
LH: loop header
LB: loop body
LE: loop exit
PB: predicated region body
PF: predicated region fallthrough
CT: control target
= control target key end

     0   :  { %s584_s0 = inlined_call_operand.vmem [shape: f32[16,128], index: 0, kind: input, shape index: {}]   ;;  %s585_s1 = inlined_call_operand.vmem [shape: f32[16,128], index: 1, kind: input, shape index: {}]   ;;  %s586_s2 = inlined_call_operand.vmem [shape: f32[16,128], index: 2, kind: input, shape index: {}]   ;;  %s587_s3 = inlined_call_operand.vmem [shape: f32[16,128], index: 3, kind: input, shape index: {}]   ;;  %s588_s5 = inlined_call_operand.vmem [shape: f32[1,8,128], index: 5, kind: output, shape index: {1}]   ;;  %s589_s6 = inlined_call_operand.vmem [shape: f32[1,8,128], index: 6, kind: output, shape index: {2}]   ;;  %s590_s4 = inlined_call_operand.vmem [shape: f32[16,128], index: 4, kind: output, shape index: {0}]  }
   0x1   :  { %v20_v0 = vld [vmem:[%s584_s0] sm:$0xff]  ;;  %v21_v1 = vld [vmem:[%s584_s0 + $0x8] sm:$0xff] }
   0x2   :  { %v22_v2 = vld [vmem:[%s587_s3] sm:$0xff]  ;;  %v23_v3 = vld [vmem:[%s587_s3 + $0x8] sm:$0xff] }
   0x3   :  { %v24_v4 = vld [vmem:[%s585_s1] sm:$0xff]  ;;  %v25_v5 = vld [vmem:[%s585_s1 + $0x8] sm:$0xff]  ;;  %v32_v6 = vsub.f32 %v20_v0, %v22_v2  ;;  %v33_v10 = vsub.f32 %v21_v1, %v23_v3 }
   0x4   :  { %v433_v7 = vadd.f32 0.0001, %v24_v4  ;;  %v28_v8 = vld [vmem:[%s586_s2] sm:$0xff]  ;;  %v29_v9 = vld [vmem:[%s586_s2 + $0x8] sm:$0xff]  ;;  %v445_v14 = vadd.f32 0.0001, %v25_v5 }
   0x5   :  { %v441_v11 = vadd.f32 0.0001, %v28_v8  ;;  %v443_v12 = vadd.f32 0.0001, %v29_v9  ;;  %v34_v13 = vand.u32 2147483647, %v32_v6 }
   0x6   :  { %v35_v15 = vand.u32 2147483647, %v33_v10 }
   0x7   :  { %v36_v16 = vmul.f32 %v34_v13, %v433_v7  ;;  %304 = vrcp.f32 %v441_v11 }
   0x8   :  { %v37_v17 = vmul.f32 %v35_v15, %v445_v14  ;;  %306 = vrcp.f32 %v443_v12  ;;  %v284_v18 = vadd.f32 %v35_v15, %v34_v13 }
   0x9   :  { %v452_v19 = vmul.f32 %v36_v16, %v441_v11 }
   0xa   :  { %v455_v20 = vmul.f32 %v37_v17, %v443_v12  ;;  %285 = vst [vmem:[%s588_s5] sm:$0xff] %v284_v18 }
  0x14   :  { %v460_v21 = vpop.eup %304 }
  0x15   :  { %v462_v22 = vpop.eup %306  ;;  %vm48_vm0 = vcmp.lt.f32.partialorder %v460_v21, 0.5  ;;  %v50_v23 = vadd.f32 1.0, %v460_v21  ;;  %v160_v35 = vmul.f32 3.0, %v460_v21 }
  0x16   :  { %vm49_vm1 = vcmp.lt.f32.partialorder %v462_v22, 0.5  ;;  %v51_v24 = vadd.f32 1.0, %v462_v22  ;;  %v161_v40 = vmul.f32 3.0, %v462_v22 }
  0x17   :  { %v52_v25 = vsel %vm48_vm0, %v50_v23, %v460_v21  ;;  %v490_v46 = vadd.f32 -1.0, %v160_v35 }
  0x18   :  { %v53_v26 = vsel %vm49_vm1, %v51_v24, %v462_v22  ;;  %v474_v27 = vadd.f32 -1.0, %v52_v25  ;;  %v493_v51 = vadd.f32 -1.0, %v161_v40 }
  0x19   :  { %v476_v28 = vadd.f32 -1.0, %v53_v26  ;;  %v499_v57 = vmul.f32 %v490_v46, %v490_v46  ;;  %v170_v58 = vmul.f32 3.0, %v490_v46  ;;  %v186_v17 = vmul.f32 7.0, %v490_v46 }
  0x1a   :  { %v56_v29 = vmul.f32 %v474_v27, %v474_v27  ;;  %v62_v30 = vmul.f32 3.0, %v474_v27  ;;  %v78_v34 = vmul.f32 7.0, %v474_v27  ;;  %v94_v43 = vmul.f32 11.0, %v474_v27 }
  0x1b   :  { %v57_v31 = vmul.f32 %v476_v28, %v476_v28  ;;  %v63_v32 = vmul.f32 3.0, %v476_v28  ;;  %v79_v37 = vmul.f32 7.0, %v476_v28  ;;  %v95_v44 = vmul.f32 11.0, %v476_v28 }
  0x1c   :  { %v64_v33 = vadd.f32 %v62_v30, %v56_v29  ;;  %v80_v39 = vadd.f32 %v78_v34, %v56_v29  ;;  %v96_v48 = vadd.f32 %v94_v43, %v56_v29  ;;  %v110_v50 = vmul.f32 15.0, %v474_v27 }
  0x1d   :  { %v65_v36 = vadd.f32 %v63_v32, %v57_v31  ;;  %v81_v42 = vadd.f32 %v79_v37, %v57_v31  ;;  %v97_v49 = vadd.f32 %v95_v44, %v57_v31  ;;  %v111_v54 = vmul.f32 15.0, %v476_v28 }
  0x1e   :  { %v66_v38 = vadd.f32 2.0, %v64_v33  ;;  %v82_v45 = vadd.f32 12.0, %v80_v39  ;;  %v98_v52 = vadd.f32 30.0, %v96_v48  ;;  %v58_v55 = vmul.f32 -582.61884, %v474_v27 }
  0x1f   :  { %v67_v41 = vadd.f32 2.0, %v65_v36  ;;  %v83_v47 = vadd.f32 12.0, %v81_v42  ;;  %v99_v53 = vadd.f32 30.0, %v97_v49  ;;  %v112_v56 = vadd.f32 %v110_v50, %v56_v29 }
  0x20   :  { %308 = vrcp.f32 %v66_v38  ;;  %v74_v59 = vmul.f32 594.7084, %v474_v27  ;;  %v113_v60 = vadd.f32 %v111_v54, %v57_v31  ;;  %v124_v61 = vmul.f32 0.13333334, %v474_v27 }
  0x21   :  { %310 = vrcp.f32 %v67_v41  ;;  %v59_v62 = vmul.f32 -582.61884, %v476_v28  ;;  %v114_v63 = vadd.f32 56.0, %v112_v56  ;;  %v125_v0 = vmul.f32 0.13333334, %v476_v28 }
  0x22   :  { %312 = vrcp.f32 %v82_v45  ;;  %v115_v1 = vadd.f32 56.0, %v113_v60  ;;  %v126_v2 = vadd.f32 1.0, %v124_v61  ;;  %v75_v3 = vmul.f32 594.7084, %v476_v28 }
  0x23   :  { %314 = vrcp.f32 %v83_v47  ;;  %v127_v4 = vadd.f32 1.0, %v125_v0  ;;  %v510_v5 = vmul.f32 %v493_v51, %v493_v51  ;;  %v60_v6 = vadd.f32 93.90152, %v58_v55 }
  0x24   :  { %316 = vrcp.f32 %v98_v52  ;;  %v171_v8 = vmul.f32 3.0, %v493_v51  ;;  %v61_v9 = vadd.f32 93.90152, %v59_v62  ;;  %v76_v10 = vadd.f32 2555.4487, %v74_v59 }
  0x25   :  { %318 = vrcp.f32 %v99_v53  ;;  %v172_v13 = vadd.f32 %v170_v58, %v499_v57  ;;  %v90_v15 = vmul.f32 12.3687725, %v474_v27  ;;  %v77_v18 = vadd.f32 2555.4487, %v75_v3 }
  0x26   :  { %320 = vlog2.f32 %v460_v21  ;;  %v173_v16 = vadd.f32 %v171_v8, %v510_v5  ;;  %v91_v23 = vmul.f32 12.3687725, %v476_v28  ;;  %v187_v25 = vmul.f32 7.0, %v493_v51 }
  0x27   :  { %322 = vrcp.f32 %v114_v63  ;;  %v174_v24 = vadd.f32 2.0, %v172_v13  ;;  %v106_v29 = vmul.f32 1.0134933e-05, %v474_v27  ;;  %v107_v30 = vmul.f32 1.0134933e-05, %v476_v28 }
  0x28   :  { %324 = vrcp.f32 %v115_v1  ;;  %v175_v31 = vadd.f32 2.0, %v173_v16  ;;  %v188_v32 = vadd.f32 %v186_v17, %v499_v57  ;;  %v189_v35 = vadd.f32 %v187_v25, %v510_v5 }
  0x29   :  { %326 = vlog2.f32 %v126_v2  ;;  %v202_v36 = vmul.f32 11.0, %v490_v46  ;;  %v92_v39 = vadd.f32 74.351204, %v90_v15  ;;  %v93_v44 = vadd.f32 74.351204, %v91_v23 }
  0x2a   :  { %328 = vlog2.f32 %v127_v4  ;;  %v190_v40 = vadd.f32 12.0, %v188_v32  ;;  %v191_v45 = vadd.f32 12.0, %v189_v35  ;;  %v108_v49 = vadd.f32 8.09289e-05, %v106_v29 }
  0x2b   :  { %330 = vrcp.f32 %v174_v24  ;;  %v203_v50 = vmul.f32 11.0, %v493_v51  ;;  %v109_v54 = vadd.f32 8.09289e-05, %v107_v30  ;;  %v204_v55 = vadd.f32 %v202_v36, %v499_v57 }
  0x2c   :  { %332 = vrcp.f32 %v175_v31  ;;  %v166_v63 = vmul.f32 -582.61884, %v490_v46  ;;  %v218_v1 = vmul.f32 15.0, %v490_v46  ;;  %v167_v17 = vmul.f32 -582.61884, %v493_v51 }
  0x2d   :  { %v309_v26 = vpop.eup %308  ;;  %334 = vrcp.f32 %v190_v40  ;;  %v205_v60 = vadd.f32 %v203_v50, %v510_v5  ;;  %v206_v0 = vadd.f32 30.0, %v204_v55  ;;  %v182_v29 = vmul.f32 594.7084, %v490_v46 }
  0x2e   :  { %v311_v33 = vpop.eup %310  ;;  %v69_v34 = vmul.f32 %v309_v26, %v60_v6  ;;  %336 = vrcp.f32 %v191_v45  ;;  %v219_v6 = vmul.f32 15.0, %v493_v51  ;;  %v220_v13 = vadd.f32 %v218_v1, %v499_v57 }
  0x2f   :  { %v313_v37 = vpop.eup %312  ;;  %v71_v38 = vmul.f32 %v311_v33, %v61_v9  ;;  %338 = vlog2.f32 %v462_v22  ;;  %v207_v4 = vadd.f32 30.0, %v205_v60  ;;  %v168_v26 = vadd.f32 93.90152, %v166_v63 }
  0x30   :  { %v315_v41 = vpop.eup %314  ;;  %v72_v42 = vadd.f32 1.0, %v69_v34  ;;  %v85_v43 = vmul.f32 %v313_v37, %v76_v10  ;;  %340 = vrcp.f32 %v206_v0  ;;  %v183_v32 = vmul.f32 594.7084, %v493_v51 }
  0x31   :  { %v73_v47 = vadd.f32 1.0, %v71_v38  ;;  %v87_v48 = vmul.f32 %v315_v41, %v77_v18  ;;  %v317_v52 = vpop.eup %316  ;;  %342 = vrcp.f32 %v207_v4  ;;  %v221_v18 = vadd.f32 %v219_v6, %v510_v5 }
  0x32   :  { %v88_v53 = vadd.f32 %v85_v43, %v72_v42  ;;  %v319_v56 = vpop.eup %318  ;;  %v101_v59 = vmul.f32 %v317_v52, %v92_v39  ;;  %v232_v33 = vmul.f32 0.13333334, %v490_v46  ;;  %v222_v34 = vadd.f32 56.0, %v220_v13 }
  0x33   :  { %v89_v58 = vadd.f32 %v87_v48, %v73_v47  ;;  %v527_v61 = vpop.eup %320  ;;  %v103_v62 = vmul.f32 %v319_v56, %v93_v44  ;;  %v233_v35 = vmul.f32 0.13333334, %v493_v51  ;;  %v169_v37 = vadd.f32 93.90152, %v167_v17 }
  0x34   :  { %v323_v2 = vpop.eup %322  ;;  %v104_v3 = vadd.f32 %v101_v59, %v88_v53  ;;  %v223_v38 = vadd.f32 56.0, %v221_v18  ;;  %v234_v40 = vadd.f32 1.0, %v232_v33  ;;  %v184_v43 = vadd.f32 2555.4487, %v182_v29 }
  0x35   :  { %v325_v8 = vpop.eup %324  ;;  %v105_v9 = vadd.f32 %v103_v62, %v89_v58  ;;  %v117_v10 = vmul.f32 %v323_v2, %v108_v49  ;;  %v235_v41 = vadd.f32 1.0, %v233_v35  ;;  %v198_v44 = vmul.f32 12.3687725, %v490_v46 }
  0x36   :  { %v327_v15 = vpop.eup %326  ;;  %v119_v16 = vmul.f32 %v325_v8, %v109_v54  ;;  %v185_v48 = vadd.f32 2555.4487, %v183_v32  ;;  %v199_v49 = vmul.f32 12.3687725, %v493_v51  ;;  %v276_v52 = vmul.f32 %v441_v11, %v433_v7 }
  0x37   :  { %v329_v23 = vpop.eup %328  ;;  %v120_v24 = vadd.f32 %v117_v10, %v104_v3  ;;  %v129_v25 = vmul.f32 0.6931472, %v327_v15  ;;  %v200_v56 = vadd.f32 74.351204, %v198_v44  ;;  %v277_v58 = vmul.f32 %v443_v12, %v445_v14 }
  0x38   :  { %v121_v30 = vadd.f32 %v119_v16, %v105_v9  ;;  %v131_v31 = vmul.f32 0.6931472, %v329_v23  ;;  %v331_v36 = vpop.eup %330  ;;  %v201_v63 = vadd.f32 74.351204, %v199_v49  ;;  %v214_v1 = vmul.f32 1.0134933e-05, %v490_v46 }
  0x39   :  { %v539_v57 = vadd.f32 2.014903, %v129_v25  ;;  %344 = vlog2.f32 %v120_v24  ;;  %v333_v39 = vpop.eup %332  ;;  %v177_v42 = vmul.f32 %v331_v36, %v168_v26  ;;  %v215_v2 = vmul.f32 1.0134933e-05, %v493_v51 }
  0x3a   :  { %v542_v5 = vadd.f32 2.014903, %v131_v31  ;;  %346 = vlog2.f32 %v121_v30  ;;  %v335_v45 = vpop.eup %334  ;;  %v179_v47 = vmul.f32 %v333_v39, %v169_v37  ;;  %v122_v3 = vadd.f32 7.5, %v474_v27 }
  0x3b   :  { %348 = vrcp.f32 %v539_v57  ;;  %v337_v50 = vpop.eup %336  ;;  %v180_v54 = vadd.f32 1.0, %v177_v42  ;;  %v193_v55 = vmul.f32 %v335_v45, %v184_v43  ;;  %v123_v8 = vadd.f32 7.5, %v476_v28 }
  0x3c   :  { %350 = vrcp.f32 %v542_v5  ;;  %v339_v53 = vpop.eup %338  ;;  %v181_v60 = vadd.f32 1.0, %v179_v47  ;;  %v195_v62 = vmul.f32 %v337_v50, %v185_v48  ;;  %v134_v13 = vadd.f32 0.5, %v474_v27 }
  0x3d   :  { %352 = vrcp.f32 %v222_v34  ;;  %v341_v59 = vpop.eup %340  ;;  %v196_v11 = vadd.f32 %v193_v55, %v180_v54  ;;  %v216_v15 = vadd.f32 8.09289e-05, %v214_v1  ;;  %v135_v17 = vadd.f32 0.5, %v476_v28 }
  0x3e   :  { %354 = vrcp.f32 %v223_v38  ;;  %v343_v0 = vpop.eup %342  ;;  %v209_v4 = vmul.f32 %v341_v59, %v200_v56  ;;  %v197_v9 = vadd.f32 %v195_v62, %v181_v60  ;;  %v217_v18 = vadd.f32 8.09289e-05, %v215_v2 }
  0x3f   :  { %356 = vlog2.f32 %v234_v40  ;;  %v211_v12 = vmul.f32 %v343_v0, %v201_v63  ;;  %v40_v39 = vmax.f32 %v452_v19, 0.0001  ;;  %v41_v42 = vmax.f32 %v455_v20, 0.0001 }
  0x40   :  { %358 = vlog2.f32 %v235_v41  ;;  %v212_v25 = vadd.f32 %v209_v4, %v196_v11  ;;  %v153_v48 = vmul.f32 0.6931472, %v527_v61  ;;  %v242_v21 = vadd.f32 0.5, %v490_v46 }
  0x41   :  { %360 = vlog2.f32 %v276_v52  ;;  %v213_v30 = vadd.f32 %v211_v12, %v197_v9  ;;  %v155_v52 = vmul.f32 0.6931472, %v339_v53  ;;  %v42_v56 = vmin.f32 %v40_v39, 1000.0 }
  0x42   :  { %362 = vlog2.f32 %v277_v58  ;;  %v43_v20 = vmin.f32 %v41_v42, 1000.0  ;;  %v243_v9 = vadd.f32 0.5, %v493_v51 }
  0x46   :  { %v345_v6 = vpop.eup %344 }
  0x47   :  { %v347_v10 = vpop.eup %346  ;;  %v145_v33 = vmul.f32 0.6931472, %v345_v6  ;;  %v231_v6 = vadd.f32 7.5, %v493_v51  ;;  %v260_v51 = vmul.f32 %v433_v7, %v433_v7 }
  0x48   :  { %v349_v16 = vpop.eup %348  ;;  %v147_v37 = vmul.f32 0.6931472, %v347_v10 }
  0x49   :  { %v351_v23 = vpop.eup %350  ;;  %v137_v24 = vmul.f32 %v349_v16, %v122_v3  ;;  %v230_v3 = vadd.f32 7.5, %v490_v46 }
  0x4a   :  { %v353_v26 = vpop.eup %352  ;;  %v139_v29 = vmul.f32 %v351_v23, %v123_v8 }
  0x4b   :  { %v355_v31 = vpop.eup %354  ;;  %v140_v32 = vsub.f32 %v134_v13, %v137_v24  ;;  %v225_v34 = vmul.f32 %v353_v26, %v216_v15 }
  0x4c   :  { %v357_v35 = vpop.eup %356  ;;  %v141_v36 = vsub.f32 %v135_v17, %v139_v29  ;;  %v227_v38 = vmul.f32 %v355_v31, %v217_v18 }
  0x4d   :  { %v359_v27 = vpop.eup %358  ;;  %v142_v28 = vmul.f32 %v140_v32, %v539_v57  ;;  %v228_v40 = vadd.f32 %v225_v34, %v212_v25  ;;  %v237_v41 = vmul.f32 0.6931472, %v357_v35 }
  0x4e   :  { %v143_v43 = vmul.f32 %v141_v36, %v542_v5  ;;  %v229_v44 = vadd.f32 %v227_v38, %v213_v30  ;;  %v239_v45 = vmul.f32 0.6931472, %v359_v27  ;;  %v361_v19 = vpop.eup %360  ;;  %v261_v36 = vmul.f32 %v445_v14, %v445_v14 }
  0x4f   :  { %v148_v47 = vadd.f32 %v145_v33, %v142_v28  ;;  %v240_v49 = vadd.f32 2.014903, %v237_v41  ;;  %364 = vlog2.f32 %v228_v40  ;;  %v363_v57 = vpop.eup %362  ;;  %v279_v60 = vmul.f32 0.6931472, %v361_v19 }
  0x50   :  { %v149_v50 = vadd.f32 %v147_v37, %v143_v43  ;;  %v241_v54 = vadd.f32 2.014903, %v239_v45  ;;  %366 = vlog2.f32 %v229_v44  ;;  %v281_v62 = vmul.f32 0.6931472, %v363_v57 }
  0x51   :  { %v150_v55 = vadd.f32 0.9189385, %v148_v47  ;;  %368 = vrcp.f32 %v240_v49 }
  0x52   :  { %v151_v58 = vadd.f32 0.9189385, %v149_v50  ;;  %370 = vrcp.f32 %v241_v54 }
  0x53   :  { %v156_v5 = vsub.f32 %v150_v55, %v153_v48 }
  0x54   :  { %v157_v59 = vsub.f32 %v151_v58, %v155_v52 }
  0x55   :  { %v158_v61 = vsel %vm48_vm0, %v156_v5, %v150_v55 }
  0x56   :  { %v159_v53 = vsel %vm49_vm1, %v157_v59, %v151_v58  ;;  %v274_v63 = vadd.f32 %v158_v61, %v42_v56  ;;  %372 = vrcp.f32 %v158_v61 }
  0x57   :  { %v275_v0 = vadd.f32 %v159_v53, %v43_v20  ;;  %374 = vrcp.f32 %v159_v53 }
  0x58   :  { %v282_v1 = vsub.f32 %v274_v63, %v279_v60 }
  0x59   :  { %v283_v2 = vsub.f32 %v275_v0, %v281_v62 }
  0x5b   :  { %v286_v11 = vadd.f32 %v283_v2, %v282_v1 }
  0x5c   :  { %v365_v4 = vpop.eup %364 }
  0x5d   :  { %v367_v8 = vpop.eup %366  ;;  %287 = vst [vmem:[%s589_s6] sm:$0xff] %v286_v11  ;;  %v253_v16 = vmul.f32 0.6931472, %v365_v4 }
  0x5e   :  { %v369_v22 = vpop.eup %368  ;;  %v255_v18 = vmul.f32 0.6931472, %v367_v8 }
  0x5f   :  { %v371_v12 = vpop.eup %370  ;;  %v245_v10 = vmul.f32 %v369_v22, %v230_v3 }
  0x60   :  { %v247_v13 = vmul.f32 %v371_v12, %v231_v6 }
  0x61   :  { %v248_v15 = vsub.f32 %v242_v21, %v245_v10 }
  0x62   :  { %v249_v17 = vsub.f32 %v243_v9, %v247_v13 }
  0x63   :  { %v250_v23 = vmul.f32 %v248_v15, %v240_v49  ;;  %v373_v26 = vpop.eup %372 }
  0x64   :  { %v251_v24 = vmul.f32 %v249_v17, %v241_v54  ;;  %v375_v46 = vpop.eup %374 }
  0x65   :  { %v256_v25 = vadd.f32 %v253_v16, %v250_v23 }
  0x66   :  { %v257_v29 = vadd.f32 %v255_v18, %v251_v24 }
  0x67   :  { %v258_v30 = vadd.f32 0.9189385, %v256_v25 }
  0x68   :  { %v259_v31 = vadd.f32 0.9189385, %v257_v29 }
  0x69   :  { %v263_v32 = vmul.f32 %v373_v26, %v258_v30 }
  0x6a   :  { %v265_v33 = vmul.f32 %v375_v46, %v259_v31 }
  0x6b   :  { %v266_v34 = vmul.f32 1.442695, %v263_v32 }
  0x6c   :  { %v268_v35 = vmul.f32 1.442695, %v265_v33 }
  0x6d   :  { %376 = vpow2.f32 %v266_v34 }
  0x6e   :  { %378 = vpow2.f32 %v268_v35 }
  0x7a   :  { %v377_v37 = vpop.eup %376 }
  0x7b   :  { %v379_v38 = vpop.eup %378  ;;  %v270_v27 = vmul.f32 %v377_v37, %v260_v51 }
  0x7c   :  { %v271_v39 = vmul.f32 %v379_v38, %v261_v36 }
  0x7d   :  { %272 = vst [vmem:[%s590_s4] sm:$0xff] %v270_v27 }
  0x7e   :  { %273 = vst [vmem:[%s590_s4 + $0x8] sm:$0xff] %v271_v39 }

</bundles_post_ra>
